<compile_context>
chip_gen: v5e
topology: v5e:2x2
jax: 0.10.0
libtpu: 0.0.40
codegen_flags: <defaults>
</compile_context>

<pallas_src>
import functools

import jax
import jax.numpy as jnp
from jax.experimental import pallas as pl
from jax.experimental.pallas import tpu as pltpu


def _round_up(x, m):
    return ((x + m - 1) // m) * m


def _attention_kernel(enc_ref, dec_ref, out_ref, m_ref, l_ref, acc_ref,
                      *, s_valid, s_tile, mask_s):
    """One (batch-tile, T-tile) output block; online softmax over the S axis.

    Ref shapes:
      enc_ref [Bt, Sk, H]  bf16   encoder states (keys AND values)
      dec_ref [Bt, Tt, H]  bf16   decoder states (queries)
      out_ref [Bt, Tt, H]  out_dtype
      m_ref   [Bt, Tt, 1]  f32    running row max
      l_ref   [Bt, Tt, 1]  f32    running exp-sum
      acc_ref [Bt, Tt, H]  f32    running unnormalized context
    """
    si = pl.program_id(2)

    @pl.when(si == 0)
    def _():
        m_ref[...] = jnp.full(m_ref.shape, -jnp.inf, m_ref.dtype)
        l_ref[...] = jnp.zeros(l_ref.shape, l_ref.dtype)
        acc_ref[...] = jnp.zeros(acc_ref.shape, acc_ref.dtype)

    enc = enc_ref[...]                                           # [Bt, Sk, H] bf16
    dec = dec_ref[...]                                           # [Bt, Tt, H] bf16

    # scores[b, t, s] == a_t[b, s, t] of the PyTorch code, so reducing over the
    # last (lane) axis here is exactly softmax(dim=1) there.  bf16 operands,
    # fp32 MXU accumulation.
    # NOTE: A.B^T contraction; if the Mosaic dump shows a per-step vxpose of
    # the enc tile, pre-transposing enc in the wrapper is the alternative --
    # but the second matmul needs enc as [S, H], so only one side can be free.
    s = jnp.einsum("bth,bsh->bts", dec, enc,
                   preferred_element_type=jnp.float32)           # [Bt, Tt, Sk] f32

    if mask_s:
        # Zero-padded encoder positions must not receive probability mass.
        col = si * s_tile + jax.lax.broadcasted_iota(jnp.int32, s.shape, 2)
        s = jnp.where(col < s_valid, s, -jnp.inf)

    m_prev = m_ref[...]
    m_new = jnp.maximum(m_prev, jnp.max(s, axis=-1, keepdims=True))
    alpha = jnp.exp(m_prev - m_new)                              # rescale old stats
    p = jnp.exp(s - m_new)                                       # unnormalized probs
    l_ref[...] = alpha * l_ref[...] + jnp.sum(p, axis=-1, keepdims=True)
    acc_ref[...] = alpha * acc_ref[...] + jnp.einsum(
        "bts,bsh->bth", p.astype(enc.dtype), enc,
        preferred_element_type=jnp.float32)
    m_ref[...] = m_new

    @pl.when(si == pl.num_programs(2) - 1)
    def _():
        # Normalization folded into the (much smaller) output tile.
        # EUP approximate reciprocal + one Newton-Raphson step (~fp32 accurate).
        denom = l_ref[...]
        r = pl.reciprocal(denom, approx=True)
        r = r * (2.0 - denom * r)
        out_ref[...] = (acc_ref[...] * r).astype(out_ref.dtype)


def attention_forward(enc_output, dec_output, *, out_dtype=None,
                      batch_tile=None, t_tile=None, s_tile=None):
    """Mirrors Attention.forward(enc_output, dec_output).

    enc_output: [B, S, H]
    dec_output: [B, T, H]
    returns:    [B, T, H] (dtype = dec_output.dtype unless out_dtype is given)
    """
    B, S, H = enc_output.shape
    Bd, T, Hd = dec_output.shape
    assert B == Bd and H == Hd

    compute_dtype = jnp.bfloat16
    if out_dtype is None:
        out_dtype = dec_output.dtype
    out_bytes = jnp.dtype(out_dtype).itemsize

    # ---- tile selection --------------------------------------------------
    # T tile: <= 256 fills the v6e/v7x 256-row MXU; keep full T when small so
    # the block equals the array dim (no (8,128) divisibility issue, no pad).
    if t_tile is None:
        Tt = T if T <= 256 else 256
    else:
        Tt = max(1, min(t_tile, T))
    Tp = T if T % Tt == 0 else _round_up(T, Tt)

    # S tile (online-softmax reduction axis): full S when small, else 512.
    if s_tile is None:
        Sk = S if S <= 512 else 512
    else:
        Sk = max(1, min(s_tile, S))
    Sp = S if S % Sk == 0 else _round_up(S, Sk)
    mask_s = Sp != S

    # Batch tile: ~1-2 MiB per step of live blocks, but keep several parallel
    # grid steps so both v7x TensorCores get work.
    per_b = Sk * H * 2 + Tt * H * (2 + 4 + out_bytes) + Tt * Sk * 4
    if batch_tile is None:
        Bt = max(1, min(B, (2 * 1024 * 1024) // max(per_b, 1)))
    else:
        Bt = max(1, min(batch_tile, B))
    while Bt > 1 and pl.cdiv(B, Bt) * (Tp // Tt) < 4:
        Bt = max(1, Bt // 2)
    Bp = B if B % Bt == 0 else _round_up(B, Bt)

    # ---- prepare inputs (bf16 MXU operands; pad only when required) -------
    def _prep(x, seq_pad):
        if x.dtype != compute_dtype:
            x = x.astype(compute_dtype)
        pb, ps = Bp - x.shape[0], seq_pad - x.shape[1]
        if pb or ps:
            x = jnp.pad(x, ((0, pb), (0, ps), (0, 0)))
        return x

    enc_p = _prep(enc_output, Sp)   # [Bp, Sp, H]  padded S columns masked in-kernel
    dec_p = _prep(dec_output, Tp)   # [Bp, Tp, H]  padded B/T rows are sliced off

    grid = (Bp // Bt, Tp // Tt, Sp // Sk)

    # ---- explicit VMEM budget (v5e default scoped limit is only 16 MiB) ---
    need = (2 * (Bt * Sk * H * 2 + Bt * Tt * H * 2 + Bt * Tt * H * out_bytes)
            + Bt * Tt * (H + 2) * 4            # fp32 scratch accumulators
            + 3 * Bt * Tt * Sk * 4)            # live scores / exp intermediates
    vmem_limit = int(min(max(2 * need, 32 * 1024 * 1024), 48 * 1024 * 1024))

    cost = pl.CostEstimate(
        flops=4 * Bp * Tp * Sp * H,                       # two batched matmuls
        transcendentals=Bp * Tp * Sp,                     # exp
        bytes_accessed=2 * (enc_p.size + dec_p.size) + out_bytes * Bp * Tp * H,
    )

    kernel = functools.partial(_attention_kernel,
                               s_valid=S, s_tile=Sk, mask_s=mask_s)

    out = pl.pallas_call(
        kernel,
        out_shape=jax.ShapeDtypeStruct((Bp, Tp, H), out_dtype),
        grid_spec=pltpu.PrefetchScalarGridSpec(
            num_scalar_prefetch=0,
            grid=grid,
            in_specs=[
                pl.BlockSpec((Bt, Sk, H), lambda b, t, s: (b, s, 0)),  # enc
                pl.BlockSpec((Bt, Tt, H), lambda b, t, s: (b, t, 0)),  # dec
            ],
            out_specs=pl.BlockSpec((Bt, Tt, H), lambda b, t, s: (b, t, 0)),
            scratch_shapes=[
                pltpu.VMEM((Bt, Tt, 1), jnp.float32),   # running max  m
                pltpu.VMEM((Bt, Tt, 1), jnp.float32),   # running sum  l
                pltpu.VMEM((Bt, Tt, H), jnp.float32),   # running acc
            ],
        ),
        compiler_params=pltpu.CompilerParams(
            dimension_semantics=("parallel", "parallel", "arbitrary"),
            vmem_limit_bytes=vmem_limit,
        ),
        cost_estimate=cost,
    )(enc_p, dec_p)

    if Bp != B or Tp != T:
        out = out[:B, :T, :]
    return out


def attention_reference(enc_output, dec_output):
    """Pure-JAX reference matching the PyTorch semantics exactly (fp32 math)."""
    a_t = jnp.einsum("bsh,bth->bst", enc_output, dec_output)     # [B, S, T]
    a_t = jax.nn.softmax(a_t, axis=1)                            # softmax over S
    c_t = jnp.einsum("bst,bsh->bth", a_t, enc_output)            # [B, T, H]
    return c_t


if __name__ == "__main__":
    # Small deterministic shapes consistent with the module's forward.
    B, enc_S, dec_T, hidden = 2, 8, 8, 32

    key = jax.random.PRNGKey(0)
    k_enc, k_dec = jax.random.split(key, 2)
    enc_output = jax.random.normal(k_enc, (B, enc_S, hidden), jnp.float32)
    dec_output = jax.random.normal(k_dec, (B, dec_T, hidden), jnp.float32)

    c_t = jax.block_until_ready(attention_forward(enc_output, dec_output))
    assert c_t.shape == (B, dec_T, hidden)

    # Tight check: reference run on the same bf16-quantized operands the kernel
    # feeds the MXU -- isolates the kernel math (online softmax, folded
    # normalization, approx reciprocal) from the intentional bf16 rounding.
    enc_q = enc_output.astype(jnp.bfloat16).astype(jnp.float32)
    dec_q = dec_output.astype(jnp.bfloat16).astype(jnp.float32)
    ref_q = attention_reference(enc_q, dec_q)
    assert jnp.allclose(c_t, ref_q, rtol=2e-2, atol=2e-2), (
        float(jnp.max(jnp.abs(c_t - ref_q))))

    # Loose sanity check against the exact fp32 PyTorch-semantics reference
    # (difference dominated by bf16 input quantization).
    ref = attention_reference(enc_output, dec_output)
    assert jnp.allclose(c_t, ref, rtol=1e-1, atol=1e-1), (
        float(jnp.max(jnp.abs(c_t - ref))))

    print("KERNEL_OK")
</pallas_src>

<mosaic_0001>
module attributes {stable_mosaic.version = 11 : i64} {
  func.func @_attention_kernel(%arg0: i32, %arg1: i32, %arg2: i32, %arg3: memref<1x8x32xbf16, #tpu.memory_space<vmem>>, %arg4: memref<1x8x32xbf16, #tpu.memory_space<vmem>>, %arg5: memref<1x8x32xf32, #tpu.memory_space<vmem>>, %arg6: memref<1x8x1xf32, #tpu.memory_space<vmem>>, %arg7: memref<1x8x1xf32, #tpu.memory_space<vmem>>, %arg8: memref<1x8x32xf32, #tpu.memory_space<vmem>>) attributes {dimension_semantics = [#tpu.dimension_semantics<parallel>, #tpu.dimension_semantics<parallel>, #tpu.dimension_semantics<arbitrary>], iteration_bounds = array<i64: 2, 1, 1>, scalar_prefetch = 0 : i64, scratch_operands = 3 : i64, tpu.core_type = #tpu.core_type<tc>, window_params = [{transform_indices = @transform_0, window_bounds = array<i64: 1, 8, 32>}, {transform_indices = @transform_1, window_bounds = array<i64: 1, 8, 32>}, {transform_indices = @transform_2, window_bounds = array<i64: 1, 8, 32>}]} {
    %c0_i32 = arith.constant 0 : i32
    %0 = arith.cmpi eq, %arg2, %c0_i32 : i32
    %1 = arith.extui %0 : i1 to i32
    %c0_i32_0 = arith.constant 0 : i32
    %2 = arith.cmpi ne, %1, %c0_i32_0 : i32
    scf.if %2 {
      %cst_29 = arith.constant 0xFF800000 : f32
      %32 = vector.broadcast %cst_29 : f32 to vector<1x8x1xf32>
      %c0_30 = arith.constant 0 : index
      %c0_31 = arith.constant 0 : index
      %c0_32 = arith.constant 0 : index
      %33 = vector.load %arg6[%c0_30, %c0_31, %c0_32] : memref<1x8x1xf32, #tpu.memory_space<vmem>>, vector<1x8x1xf32>
      tpu.vector_store %arg6[%c0_30, %c0_31, %c0_32], %32 {strides = array<i32>} : memref<1x8x1xf32, #tpu.memory_space<vmem>>, vector<1x8x1xf32>,
      %cst_33 = arith.constant 0.000000e+00 : f32
      %34 = vector.broadcast %cst_33 : f32 to vector<1x8x1xf32>
      %c0_34 = arith.constant 0 : index
      %c0_35 = arith.constant 0 : index
      %c0_36 = arith.constant 0 : index
      %35 = vector.load %arg7[%c0_34, %c0_35, %c0_36] : memref<1x8x1xf32, #tpu.memory_space<vmem>>, vector<1x8x1xf32>
      tpu.vector_store %arg7[%c0_34, %c0_35, %c0_36], %34 {strides = array<i32>} : memref<1x8x1xf32, #tpu.memory_space<vmem>>, vector<1x8x1xf32>,
      %cst_37 = arith.constant 0.000000e+00 : f32
      %36 = vector.broadcast %cst_37 : f32 to vector<1x8x32xf32>
      %c0_38 = arith.constant 0 : index
      %c0_39 = arith.constant 0 : index
      %c0_40 = arith.constant 0 : index
      %37 = vector.load %arg8[%c0_38, %c0_39, %c0_40] : memref<1x8x32xf32, #tpu.memory_space<vmem>>, vector<1x8x32xf32>
      tpu.vector_store %arg8[%c0_38, %c0_39, %c0_40], %36 {strides = array<i32>} : memref<1x8x32xf32, #tpu.memory_space<vmem>>, vector<1x8x32xf32>,
    } else {
    }
    %c0 = arith.constant 0 : index
    %c0_1 = arith.constant 0 : index
    %c0_2 = arith.constant 0 : index
    %3 = vector.load %arg3[%c0, %c0_1, %c0_2] : memref<1x8x32xbf16, #tpu.memory_space<vmem>>, vector<1x8x32xbf16>
    %c0_3 = arith.constant 0 : index
    %c0_4 = arith.constant 0 : index
    %c0_5 = arith.constant 0 : index
    %4 = vector.load %arg4[%c0_3, %c0_4, %c0_5] : memref<1x8x32xbf16, #tpu.memory_space<vmem>>, vector<1x8x32xbf16>
    "tpu.trace_start"() <{level = 10 : i32, message = "bth,bsh->bts"}> : () -> ()
    %cst = arith.constant dense<0.000000e+00> : vector<1x8x8xf32>
    %5 = tpu.matmul %4, %3, %cst {dimension_numbers = #tpu.dot_dimension_numbers<[2], [2], [1], [1], [0, 0, 0, 1, 1, 1], [0], [0]>} : vector<1x8x32xbf16>, vector<1x8x32xbf16>, vector<1x8x8xf32> -> vector<1x8x8xf32>
    "tpu.trace_stop"() : () -> ()
    %c0_6 = arith.constant 0 : index
    %c0_7 = arith.constant 0 : index
    %c0_8 = arith.constant 0 : index
    %6 = vector.load %arg6[%c0_6, %c0_7, %c0_8] : memref<1x8x1xf32, #tpu.memory_space<vmem>>, vector<1x8x1xf32>
    %cst_9 = arith.constant dense<0xFF800000> : vector<1x8xf32>
    %7 = vector.multi_reduction <maximumf>, %5, %cst_9 [2] : vector<1x8x8xf32> to vector<1x8xf32>
    %8 = vector.shape_cast %7 : vector<1x8xf32> to vector<1x8x1xf32>
    %9 = arith.maximumf %6, %8 : vector<1x8x1xf32>
    %10 = arith.subf %6, %9 : vector<1x8x1xf32>
    %11 = math.exp %10 : vector<1x8x1xf32>
    %12 = vector.broadcast %9 : vector<1x8x1xf32> to vector<1x8x8xf32>
    %13 = arith.subf %5, %12 : vector<1x8x8xf32>
    %14 = math.exp %13 : vector<1x8x8xf32>
    %c0_10 = arith.constant 0 : index
    %c0_11 = arith.constant 0 : index
    %c0_12 = arith.constant 0 : index
    %15 = vector.load %arg7[%c0_10, %c0_11, %c0_12] : memref<1x8x1xf32, #tpu.memory_space<vmem>>, vector<1x8x1xf32>
    %16 = arith.mulf %11, %15 : vector<1x8x1xf32>
    %cst_13 = arith.constant dense<0.000000e+00> : vector<1x8xf32>
    %17 = vector.multi_reduction <add>, %14, %cst_13 [2] : vector<1x8x8xf32> to vector<1x8xf32>
    %18 = vector.shape_cast %17 : vector<1x8xf32> to vector<1x8x1xf32>
    %19 = arith.addf %16, %18 : vector<1x8x1xf32>
    %c0_14 = arith.constant 0 : index
    %c0_15 = arith.constant 0 : index
    %c0_16 = arith.constant 0 : index
    %20 = vector.load %arg7[%c0_14, %c0_15, %c0_16] : memref<1x8x1xf32, #tpu.memory_space<vmem>>, vector<1x8x1xf32>
    tpu.vector_store %arg7[%c0_14, %c0_15, %c0_16], %19 {strides = array<i32>} : memref<1x8x1xf32, #tpu.memory_space<vmem>>, vector<1x8x1xf32>,
    %c0_17 = arith.constant 0 : index
    %c0_18 = arith.constant 0 : index
    %c0_19 = arith.constant 0 : index
    %21 = vector.load %arg8[%c0_17, %c0_18, %c0_19] : memref<1x8x32xf32, #tpu.memory_space<vmem>>, vector<1x8x32xf32>
    %22 = vector.broadcast %11 : vector<1x8x1xf32> to vector<1x8x32xf32>
    %23 = arith.mulf %22, %21 : vector<1x8x32xf32>
    %24 = arith.truncf %14 : vector<1x8x8xf32> to vector<1x8x8xbf16>
    "tpu.trace_start"() <{level = 10 : i32, message = "bts,bsh->bth"}> : () -> ()
    %cst_20 = arith.constant dense<0.000000e+00> : vector<1x8x32xf32>
    %25 = tpu.matmul %24, %3, %cst_20 {dimension_numbers = #tpu.dot_dimension_numbers<[2], [1], [1], [2], [0, 0, 0, 1, 1, 2], [0], [0]>} : vector<1x8x8xbf16>, vector<1x8x32xbf16>, vector<1x8x32xf32> -> vector<1x8x32xf32>
    "tpu.trace_stop"() : () -> ()
    %26 = arith.addf %23, %25 : vector<1x8x32xf32>
    %c0_21 = arith.constant 0 : index
    %c0_22 = arith.constant 0 : index
    %c0_23 = arith.constant 0 : index
    %27 = vector.load %arg8[%c0_21, %c0_22, %c0_23] : memref<1x8x32xf32, #tpu.memory_space<vmem>>, vector<1x8x32xf32>
    tpu.vector_store %arg8[%c0_21, %c0_22, %c0_23], %26 {strides = array<i32>} : memref<1x8x32xf32, #tpu.memory_space<vmem>>, vector<1x8x32xf32>,
    %c0_24 = arith.constant 0 : index
    %c0_25 = arith.constant 0 : index
    %c0_26 = arith.constant 0 : index
    %28 = vector.load %arg6[%c0_24, %c0_25, %c0_26] : memref<1x8x1xf32, #tpu.memory_space<vmem>>, vector<1x8x1xf32>
    tpu.vector_store %arg6[%c0_24, %c0_25, %c0_26], %9 {strides = array<i32>} : memref<1x8x1xf32, #tpu.memory_space<vmem>>, vector<1x8x1xf32>,
    %c0_i32_27 = arith.constant 0 : i32
    %29 = arith.cmpi eq, %arg2, %c0_i32_27 : i32
    %30 = arith.extui %29 : i1 to i32
    %c0_i32_28 = arith.constant 0 : i32
    %31 = arith.cmpi ne, %30, %c0_i32_28 : i32
    scf.if %31 {
      %c0_29 = arith.constant 0 : index
      %c0_30 = arith.constant 0 : index
      %c0_31 = arith.constant 0 : index
      %32 = vector.load %arg7[%c0_29, %c0_30, %c0_31] : memref<1x8x1xf32, #tpu.memory_space<vmem>>, vector<1x8x1xf32>
      %33 = tpu.reciprocal %32 {approx = true} : vector<1x8x1xf32> -> vector<1x8x1xf32>
      %34 = arith.mulf %32, %33 : vector<1x8x1xf32>
      %cst_32 = arith.constant 2.000000e+00 : f32
      %35 = vector.broadcast %cst_32 : f32 to vector<1x8x1xf32>
      %36 = arith.subf %35, %34 : vector<1x8x1xf32>
      %37 = arith.mulf %33, %36 : vector<1x8x1xf32>
      %c0_33 = arith.constant 0 : index
      %c0_34 = arith.constant 0 : index
      %c0_35 = arith.constant 0 : index
      %38 = vector.load %arg8[%c0_33, %c0_34, %c0_35] : memref<1x8x32xf32, #tpu.memory_space<vmem>>, vector<1x8x32xf32>
      %39 = vector.broadcast %37 : vector<1x8x1xf32> to vector<1x8x32xf32>
      %40 = arith.mulf %38, %39 : vector<1x8x32xf32>
      %c0_36 = arith.constant 0 : index
      %c0_37 = arith.constant 0 : index
      %c0_38 = arith.constant 0 : index
      %41 = vector.load %arg5[%c0_36, %c0_37, %c0_38] : memref<1x8x32xf32, #tpu.memory_space<vmem>>, vector<1x8x32xf32>
      tpu.vector_store %arg5[%c0_36, %c0_37, %c0_38], %40 {strides = array<i32>} : memref<1x8x32xf32, #tpu.memory_space<vmem>>, vector<1x8x32xf32>,
    } else {
    }
    return
  }
  func.func @transform_0(%arg0: i32, %arg1: i32, %arg2: i32) -> (i32, i32, i32) {
    %c0_i32 = arith.constant 0 : i32
    %c0_i32_0 = arith.constant 0 : i32
    return %arg0, %arg2, %c0_i32 : i32, i32, i32
  }
  func.func @transform_1(%arg0: i32, %arg1: i32, %arg2: i32) -> (i32, i32, i32) {
    %c0_i32 = arith.constant 0 : i32
    %c0_i32_0 = arith.constant 0 : i32
    return %arg0, %arg1, %c0_i32 : i32, i32, i32
  }
  func.func @transform_2(%arg0: i32, %arg1: i32, %arg2: i32) -> (i32, i32, i32) {
    %c0_i32 = arith.constant 0 : i32
    %c0_i32_0 = arith.constant 0 : i32
    return %arg0, %arg1, %c0_i32 : i32, i32, i32
  }
}

</mosaic_0001>

<bundles_post_ra>
// kernel: tpu_custom_call.1
= control target key start
LH: loop header
LB: loop body
LE: loop exit
PB: predicated region body
PF: predicated region fallthrough
CT: control target
= control target key end

     0   :  { %7 = vsyncpa [#allocation6], 0  ;;  %s858_s0 = inlined_call_operand.hbm [shape: bf16[2,8,32], index: 0, kind: input, shape index: {}]   ;;  %s859_s1 = inlined_call_operand.hbm [shape: bf16[2,8,32], index: 1, kind: input, shape index: {}]   ;;  %s860_s2 = inlined_call_operand.hbm [shape: f32[2,8,32], index: 2, kind: output, shape index: {}]  }
   0x1   :  { %9 = vsyncpa [#allocation6 + $0x1], 0 }
   0x2   :  { %10 = vsyncpa [#allocation9], 0 }
   0x3   :  { %12 = vsyncpa [#allocation9 + $0x1], 0 }
   0x4   :  { %13 = vsyncpa [#allocation7], 0 }
   0x5   :  { %15 = vsyncpa [#allocation7 + $0x1], 0  ;;  %s717_s9 = smov 0   ;;  %s719_s10 = smov 0  }
   0x6   :  { %s721_s11 = smov 0   ;;  %s723_s12 = smov 0  }
   0x7   :  { %s725_s13 = smov 0   ;;  %s727_s14 = smov 0  }
   0x8 LB: > { %s454_s15 = sadd.s32 4294967295, %s697_s14   ;;  %s455_s16 = sadd.s32 4294967294, %s697_s14   ;;  %s697_s14 = sphi %s727_s14, %s21_s14   ;;  %s693_s13 = sphi %s725_s13, %s869_s13   ;;  %s689_s12 = sphi %s723_s12, %s868_s12   ;;  %s685_s11 = sphi %s721_s11, %s867_s11   ;;  %s681_s10 = sphi %s719_s10, %s866_s10   ;;  %s677_s9 = sphi %s717_s9, %s865_s9  }
   0x9   : > { %s40_s17 = sadd.s32 1, %s693_s13  ;;  %s49_s18 = sadd.s32 1, %s685_s11 }
   0xa   : > { %p42_p0 = scmp.ge.s32.totalorder %s40_s17, 2  ;;  %p56_p1 = scmp.ne.s32.totalorder %s685_s11, %s681_s10 }
   0xb   : > { %p57_p2 = scmp.eq.s32.totalorder %s697_s14, 0  ;;  %p62_p3 = scmp.ne.s32.totalorder %s681_s10, %s677_s9 }
   0xc   : > { %s871_s17 = smov (%p42_p0, %s40_s17), 0  ;;  %p63_p5 = scmp.eq.s32.totalorder %s454_s15, 0 }
   0xd   : > { %p758_p4 = por %p57_p2, %p56_p1  ;;  %s44_s20 = ssub.s32 %s693_s13, %s871_s17 }
   0xe   : > { %p116_p6 = scmp.eq.s32.totalorder %s454_s15, 1  ;;  %p47_p7 = scmp.eq.s32.totalorder %s44_s20, 0 }
   0xf   : > { %p764_p8 = por %p63_p5, %p62_p3  ;;  %p122_p10 = scmp.eq.s32.totalorder %s455_s16, 1 }
  0x10   : > { %p768_p9 = por %p116_p6, %p56_p1  ;;  %p457_p12 = scmp.ge.s32.totalorder %s697_s14, 2 }
  0x11   : > { %s773_s23 = scalar_select %p47_p7, %s685_s11, %s49_s18  }
  0x12   : > { %p775_p11 = por %p122_p10, %p62_p3  ;;  %p489_p13 = scmp.lt.s32.totalorder %s697_s14, 2 }
  0x13   : > { %s142_s25 = sand.u32 1, %s685_s11   ;;  %s459_s27 = sshll.u32 %s693_s13, 2 }
  0x14   : > { %s458_s26 = sshll.u32 %s142_s25, 2  ;;  %s151_s30 = scalar_lea.hbm %s858_s0, %s459_s27 }
  0x15   : > { %s146_s3 = scalar_lea.vmem [#allocation5], %s458_s26  ;;  %s153_s5 = sshll.u32 %s151_s30, 4  ;;  %s154_s5 = int_to_ptr.hbm [resolvable:$true] %s153_s5 }
  0x16   : > { %s155_s4 = sshll.u32 %s146_s3, 4  ;;  %p479_p0 = pnand %p489_p13, %p758_p4  ;;  %s156_s4 = int_to_ptr.vmem [resolvable:$true] %s155_s4 }
  0x17   : > { %p462_p1 = scmp.ge.s32.totalorder %s697_s14, 1  ;;  %p180_p2 = scmp.lt.s32.totalorder %s697_s14, 3 }
  0x18   : > { %s143_s6 = scalar_lea.sflag [#allocation6], %s142_s25  ;;  %s171_s15 = scalar_lea.hbm %s859_s1, %s459_s27 }
  0x19   : > { %481 = dma.hbm_to_vmem [thread:$0]  (!%p479_p0), %s154_s5, 64, %s156_s4, %s143_s6  }
  0x1a   : > { %p181_p3 = pnand %p462_p1, %p180_p2  ;;  %s166_s16 = scalar_lea.vmem [#allocation8], %s458_s26 }
  0x1b   : > { %s175_s18 = sshll.u32 %s166_s16, 4  ;;  %s173_s20 = sshll.u32 %s171_s15, 4  ;;  %s176_s18 = int_to_ptr.vmem [resolvable:$true] %s175_s18  ;;  %s174_s20 = int_to_ptr.hbm [resolvable:$true] %s173_s20 }
  0x1c   : > { %s163_s28 = scalar_lea.sflag [#allocation9], %s142_s25  ;;  %184 = sbr.rel (%p181_p3) target bundleno = 652 (0x28c), region = 28 }
  0x1d   : > { %484 = dma.hbm_to_vmem [thread:$0]  (!%p479_p0), %s174_s20, 64, %s176_s18, %s163_s28  }
  0x1e   : > { %s794_s19 = sand.u32 (!%p181_p3), 1, %s681_s10  }
  0x1f   : > { %s463_s29 = sshll.u32 (!%p181_p3), %s794_s19, 2  ;;  %s187_s30 = scalar_lea.sflag (!%p181_p3), [#allocation6], %s794_s19 }
  0x20   : > { %s190_s3 = scalar_lea.vmem (!%p181_p3), [#allocation5], %s463_s29 }
  0x21   : > { %664 = dma.done.wait (%p764_p8), %s187_s30, 64  }
  0x22   : > { %666 = vsyncadd (%p764_p8), %s187_s30, 4294967232  ;;  %s197_s26 = scalar_lea.sflag [#allocation9], %s794_s19  ;;  %s200_s25 = scalar_lea.vmem [#allocation8], %s463_s29 }
  0x23   : > { %668 = dma.done.wait (%p764_p8), %s197_s26, 64  }
  0x24   : > { %670 = vsyncadd (%p764_p8), %s197_s26, 4294967232  ;;  %vm235_vm0 = vcmask 261120   ;;  %v699_v0 = vmov 0.0   ;;  %v237_v1 = vld [vmem:[%s190_s3] sm:$0xf]  ;;  %vm232_vm1 = vcmask 7168  }
  0x25   : > { %236 = vst.msk [vmem:[#allocation4] sm:$0xff] %vm235_vm0, %v699_v0  ;;  %v244_v2 = vsel %vm235_vm0, %v237_v1, 0  ;;  %v238_v3 = vld [vmem:[%s200_s25] sm:$0xf]  ;;  %v700_v4 = vmov -inf   ;;  %vm260_vm2 = vcmask 64512  }
  0x26   : > { %253 = vmatpush.bf16.xpose.msra.mxu0 %v244_v2  ;;  %233 = vst.msk [vmem:[#allocation2] sm:$0xff] %vm232_vm1, %v700_v4  ;;  %v701_v8 = vmov 0   ;;  %vm295_vm3 = vcmask 1043456   ;;  %s465_s21 = sshll.u32 %s794_s19, 3  ;;  %s469_s27 = sshll.u32 %s689_s12, 3 }
  0x27   : > { %234 = vst.msk [vmem:[#allocation3] sm:$0xff] %vm232_vm1, %v699_v0  ;;  %542 = vset.pattern.permute.xlu0 %v701_v8  ;;  %543 = vset.pattern.permute.xlu1 %v701_v8  ;;  %v296_v13 = vsel %vm295_vm3, %v237_v1, 0  ;;  %s342_s6 = scalar_lea.hbm %s860_s2, %s469_s27  ;;  %s226_s7 = scalar_lea.vmem [#allocation10], %s465_s21 }
  0x28   : > { %544 = vset.pattern.permute.xlu2 %v701_v8  ;;  %305 = vmatpush.bf16.msra.mxu1 %v296_v13  ;;  %s344_s8 = sshll.u32 %s226_s7, 4  ;;  %s346_s15 = sshll.u32 %s342_s6, 4  ;;  %s345_s8 = int_to_ptr.vmem [resolvable:$true] %s344_s8  ;;  %s347_s15 = int_to_ptr.hbm [resolvable:$true] %s346_s15 }
  0x29   : > { %s331_s16 = scalar_lea.sflag [#allocation7], %s794_s19  ;;  %s625_s18 = sshra.s32 %s347_s15, 4  ;;  %s626_s18 = int_to_ptr.hbm [resolvable:$true] %s625_s18 }
  0x2a   : > { %s627_s20 = scalar_lea.hbm %s626_s18, 8  ;;  %s631_s29 = scalar_lea.hbm %s860_s2, 16 }
  0x2b   : > { %p628_p4 = scmp.ne.s32.totalorder %s626_s18, %s627_s20  ;;  %p632_p7 = scmp.lt.s32.totalorder %s626_s18, %s860_s2 }
  0x2c   : > { %v284_v32 = vld [vmem:[#allocation4] sm:$0xff]  ;;  %p633_p8 = scmp.lt.s32.totalorder %s631_s29, %s627_s20 }
  0x2d   : > { %466 = vmatmul.msk.bf16.vlgmr.msra.gmra.mxu0 %vm235_vm0, %v238_v3  ;;  %v259_v9 = vld [vmem:[#allocation2] sm:$0xff]  ;;  %p629_p5 = pnand %p628_p4, %p768_p9 }
  0x2e   : > { %v276_v22 = vld [vmem:[#allocation3] sm:$0xff]  ;;  %p634_p10 = por %p633_p8, %p632_p7 }
  0x2f   : > { %p630_p6 = pneg %p629_p5 }
  0x31   : > { %p635_p13 = pnand %p634_p10, %p630_p6 }
  0xaa   : > { %v255_v5 = vpop.f32.mrf.mxu0 }
  0xab   : > { %v261_v6 = vsel %vm260_vm2, %v255_v5, -inf }
  0xac   : > { %262 = vmax.xlane.f32.xlu0 %v261_v6 }
  0xb2   : > { %v257_v7 = vpop.f32.mrf.mxu0 }
 0x11f   : > { %v263_v10 = vpop.xlane.xlu0 %262 }
 0x120   : > { %v264_v11 = vmax.f32 %v259_v9, %v263_v10 }
 0x122   : > { %v265_v12 = vsub.f32 %v259_v9, %v264_v11  ;;  %313 = vst.msk [vmem:[#allocation2] sm:$0xff] %vm232_vm1, %v264_v11  ;;  %270 = vperm.xlu0 %542, %v264_v11  }
 0x124   : > { %v266_v20 = vmul.f32 1.442695, %v265_v12 }
 0x194   : > { %v271_v14 = vpop.permute.xlu0 %270 }
 0x195   : > { %v273_v15 = vsub.f32 %v255_v5, %v271_v14 }
 0x197   : > { %v274_v16 = vmul.f32 1.442695, %v273_v15 }
 0x199   : > { %545 = vpow2.f32 %v274_v16 }
 0x19a   : > { %547 = vpow2.f32 %v266_v20 }
 0x19f   : > { %v546_v17 = vpop.eup %545 }
 0x1a0   : > { %v278_v18 = vsel %vm260_vm2, %v546_v17, 0.0  ;;  %v291_v19 = vpack.c.bf16 %v546_v17, %v546_v17  ;;  %v548_v21 = vpop.eup %547 }
 0x1a1   : > { %279 = vadd.xlane.f32.xlu1 %v278_v18  ;;  %v277_v23 = vmul.f32 %v548_v21, %v276_v22 }
 0x1a2   : > { %467 = vmatmul.msk.bf16.vlgmr.msra.gmra.mxu1 %vm260_vm2, %v291_v19 }
 0x1ba   : > { %287 = vperm.xlu1 %543, %v548_v21  }
 0x214   : > { %v280_v24 = vpop.xlane.xlu1 %279 }
 0x215   : > { %v281_v25 = vadd.f32 %v280_v24, %v277_v23 }
 0x217   : > { %283 = vst.msk [vmem:[#allocation3] sm:$0xff] %vm232_vm1, %v281_v25 }
 0x21e   : > { %v317_v26 = vld [vmem:[#allocation3] sm:$0xff] }
 0x21f   : > { %v307_v27 = vpop.f32.mrf.mxu1  ;;  %549 = vrcp.f32 %v317_v26 }
 0x225   : > { %v550_v28 = vpop.eup %549 }
 0x226   : > { %v319_v29 = vmul.f32 %v550_v28, %v317_v26 }
 0x227   : > { %v309_v30 = vpop.f32.mrf.mxu1 }
 0x228   : > { %v320_v31 = vsub.f32 2.0, %v319_v29 }
 0x22a   : > { %v321_v33 = vmul.f32 %v550_v28, %v320_v31 }
 0x22c   : > { %v288_v34 = vpop.permute.xlu1 %287  ;;  %325 = vperm.xlu2 %544, %v321_v33  }
 0x22d   : > { %v290_v35 = vmul.f32 %v288_v34, %v284_v32 }
 0x22f   : > { %v311_v36 = vadd.f32 %v307_v27, %v290_v35 }
 0x231   : > { %312 = vst.msk [vmem:[#allocation4] sm:$0xff] %vm235_vm0, %v311_v36 }
 0x238   : > { %v322_v37 = vld [vmem:[#allocation4] sm:$0xff] }
 0x286   : > { %v326_v38 = vpop.permute.xlu2 %325 }
 0x287   : > { %v328_v39 = vmul.f32 %v326_v38, %v322_v37 }
 0x289   : > { %329 = vst.msk [vmem:[%s226_s7] sm:$0xff] %vm235_vm0, %v328_v39 }
 0x28a   : > { %638 = shalt.err (!%p635_p13)
}
 0x28b   : > { %476 = dma.vmem_to_hbm [thread:$0]  (%p768_p9), %s345_s8, 128, %s347_s15, %s331_s16  }
 0x28c PF: > { %s358_s19 = sand.u32 1, %s677_s9   ;;  %p486_p0 = pnand %p457_p12, %p775_p11 }
 0x28d   : > { %s359_s26 = scalar_lea.sflag [#allocation7], %s358_s19 }
 0x28e   : > { %p487_p1 = pneg %p486_p0 }
 0x290   : > { %672 = dma.done.wait (%p487_p1), %s359_s26, 128  }
 0x291   : > { %674 = vsyncadd (%p487_p1), %s359_s26, 4294967168  ;;  %s21_s14 = sadd.s32 1, %s697_s14   ;;  %s865_s9 = smov %s681_s10 }
 0x292   : > { %p18_p2 = scmp.ge.s32.totalorder %s21_s14, 4   ;;  %s866_s10 = smov %s685_s11 }
 0x293   : > { %s867_s11 = smov %s773_s23  ;;  %s868_s12 = smov %s693_s13 }
 0x294   : > { %s869_s13 = smov %s871_s17  ;;  %20 = sbr.rel (!%p18_p2) target bundleno = 8 (0x8), region = 94 }
 0x299   :  { %365 = vsyncpa [#allocation6], 1 }
 0x29a   :  { %367 = vsyncpa [#allocation6 + $0x1], 1 }
 0x29b   :  { %368 = vsyncpa [#allocation9], 1 }
 0x29c   :  { %370 = vsyncpa [#allocation9 + $0x1], 1 }
 0x29d   :  { %371 = vsyncpa [#allocation7], 1 }
 0x29e   :  { %373 = vsyncpa [#allocation7 + $0x1], 1 }

</bundles_post_ra>
